<compile_context>
chip_gen: v5e
topology: v5e:2x2
jax: 0.10.0
libtpu: 0.0.40
codegen_flags: <defaults>
</compile_context>

<pallas_src>
import jax
import jax.numpy as jnp
from jax.experimental import pallas as pl
from jax.experimental.pallas import tpu as pltpu


# ----------------------------- Pallas kernel -------------------------------

def _attention_block_kernel(g_ref, x_ref, wg_ref, wx_ref, b_ref, wp_ref,
                            bp_ref, o_ref):
    # pixels-on-lane layout (per grid step):
    #   g_ref: (nb, F_g, TP), x_ref: (nb, F_l, TP), o_ref: (nb, F_l, TP)
    #   wg_ref: (F_int, F_g), wx_ref: (F_int, F_l), b_ref: (F_int, 1)
    #   wp_ref: (1, F_int), bp_ref: (1, 1) in SMEM
    nb = g_ref.shape[0]
    mxu_dt = wg_ref.dtype
    for bi in range(nb):                       # small static unroll (nb <= 8)
        g = g_ref[bi]                          # (F_g, TP)
        x = x_ref[bi]                          # (F_l, TP), kept in store dtype

        # fused 1x1 convs + folded BN:  a = relu(Wg @ g + Wx @ x + (bg + bx))
        a = jnp.dot(wg_ref[...], g.astype(mxu_dt),
                    preferred_element_type=jnp.float32)
        a = a + jnp.dot(wx_ref[...], x.astype(mxu_dt),
                        preferred_element_type=jnp.float32)
        a = jnp.maximum(a + b_ref[...], 0.0)                 # (F_int, TP) f32

        # psi conv (F_int -> 1) + folded BN as a lane-dense (1, TP) matmul
        logit = jnp.dot(wp_ref[...], a.astype(wp_ref.dtype),
                        preferred_element_type=jnp.float32) + bp_ref[0, 0]
        psi = jax.nn.sigmoid(logit).astype(o_ref.dtype)      # (1, TP), narrow

        o_ref[bi] = x * psi                    # broadcast over channels


# ------------------------------ wrapper ------------------------------------

def attention_block_pallas(g_nchw, x_nchw, params, *,
                           max_tile_p=32768, max_batch_block=8,
                           use_bf16_mxu=False):
    """g_nchw: (N, F_g, H, W), x_nchw: (N, F_l, H, W) -> (N, F_l, H, W)."""
    N, F_g, H, W = g_nchw.shape
    _, F_l, _, _ = x_nchw.shape
    HW = H * W
    in_dtype = x_nchw.dtype

    # ---- fold BatchNorm (inference) into the 1x1 convs (plain-JAX glue) ----
    def fold(w, b, gamma, beta, mean, var, eps=1e-5):
        scale = gamma / jnp.sqrt(var + eps)            # (Cout,)
        return w * scale[:, None], (b - mean) * scale + beta

    wg_eff, bg_eff = fold(params['wg'], params['bg'], params['g_gamma'],
                          params['g_beta'], params['g_mean'], params['g_var'])
    wx_eff, bx_eff = fold(params['wx'], params['bx'], params['x_gamma'],
                          params['x_beta'], params['x_mean'], params['x_var'])
    wp_eff, bp_eff = fold(params['wpsi'], params['bpsi'], params['p_gamma'],
                          params['p_beta'], params['p_mean'], params['p_var'])
    F_int = wg_eff.shape[0]

    # MXU dtype: the input dtype, or bf16 when explicitly requested for f32
    # inputs (changes numerics slightly — that's why it is flag-gated).
    mxu_dtype = (jnp.bfloat16
                 if (use_bf16_mxu and in_dtype == jnp.float32) else in_dtype)
    wg_k = wg_eff.astype(mxu_dtype)                              # (F_int, F_g)
    wx_k = wx_eff.astype(mxu_dtype)                              # (F_int, F_l)
    b_k = (bg_eff + bx_eff).reshape(F_int, 1).astype(jnp.float32)
    wp_dtype = jnp.bfloat16 if use_bf16_mxu else jnp.float32
    wp_k = wp_eff.reshape(1, F_int).astype(wp_dtype)
    bp_k = bp_eff.reshape(1, 1).astype(jnp.float32)              # SMEM scalar

    # NCHW -> (N, C, H*W): free reshape — NO transpose, no extra HBM pass.
    g_r = g_nchw.reshape(N, F_g, HW)
    x_r = x_nchw.reshape(N, F_l, HW)

    # ---------------- tile sizing (HBM-roofline oriented) -------------------
    LANE = 128
    dtype_bytes = jnp.dtype(in_dtype).itemsize
    per_px_io = (F_g + 2 * F_l) * dtype_bytes     # HBM bytes / pixel / image
    per_px_act = F_int * 4                        # f32 activation 'a'
    vmem_budget = 24 << 20                        # safe even on v7x (64 MiB)
    target_step_bytes = 2 << 20                   # ~2 MiB HBM traffic / step

    # pixels per step: big enough to amortize ~0.35 us per-step overhead,
    # small enough that double-buffered IO + the f32 activation fit the budget.
    tile_p = min(max_tile_p,
                 vmem_budget // (2 * per_px_io + 2 * per_px_act),
                 max(target_step_bytes // per_px_io, LANE))
    tile_p = max(LANE, (tile_p // LANE) * LANE)
    tile_p = min(tile_p, pl.cdiv(HW, LANE) * LANE)
    num_p_tiles = pl.cdiv(HW, tile_p)

    # batch block: when the whole image fits in one pixel tile, pack several
    # images per grid step so per-step HBM bytes stay large (small-HW stages).
    nb = 1
    if num_p_tiles == 1 and N > 1:
        step_bytes = per_px_io * tile_p
        fit = vmem_budget // (tile_p * (2 * per_px_io + 2 * per_px_act))
        nb = int(max(1, min(N, max_batch_block, max(fit, 1),
                            max(target_step_bytes // step_bytes, 1),
                            pl.cdiv(N, 2))))   # keep >=2 steps for v7x's 2 TCs
    num_b_tiles = pl.cdiv(N, nb)

    # N == 1 with a tiny image: split pixels so both v7x TensorCores get work.
    if num_b_tiles * num_p_tiles < 2 and pl.cdiv(HW, LANE) >= 2:
        tile_p = pl.cdiv(pl.cdiv(HW, LANE), 2) * LANE
        num_p_tiles = pl.cdiv(HW, tile_p)

    grid = (num_b_tiles, num_p_tiles)

    # explicit scoped-VMEM limit sized from the real footprint (2x headroom).
    w_bytes = ((wg_k.size + wx_k.size) * jnp.dtype(mxu_dtype).itemsize
               + (b_k.size + wp_k.size + bp_k.size) * 4)
    est_vmem = (2 * (F_g + 2 * F_l) * nb * tile_p * dtype_bytes   # dbl-buf IO
                + 2 * nb * F_int * tile_p * 4                     # 'a' + temps
                + w_bytes)
    vmem_limit = int(min(max(2 * est_vmem, 32 << 20), 48 << 20))

    # advisory scheduling hint for XLA (kernel sits inside a larger graph)
    cost = pl.CostEstimate(
        flops=2 * N * HW * F_int * (F_g + F_l + 2) + N * HW * F_l,
        transcendentals=N * HW,                                   # sigmoid
        bytes_accessed=N * HW * per_px_io + int(w_bytes))

    out_flat = pl.pallas_call(
        _attention_block_kernel,
        out_shape=jax.ShapeDtypeStruct((N, F_l, HW), in_dtype),
        grid=grid,
        in_specs=[
            # pixel streams: (batch block, channels on sublane, pixels on lane)
            pl.BlockSpec((nb, F_g, tile_p), lambda bi, pi: (bi, 0, pi)),
            pl.BlockSpec((nb, F_l, tile_p), lambda bi, pi: (bi, 0, pi)),
            # folded weights/biases: whole-array, single-copy VMEM residents
            # (no per-step re-DMA, no double-buffering of constant operands)
            pl.BlockSpec(memory_space=pltpu.MemorySpace.VMEM),   # Wg (F_int,F_g)
            pl.BlockSpec(memory_space=pltpu.MemorySpace.VMEM),   # Wx (F_int,F_l)
            pl.BlockSpec(memory_space=pltpu.MemorySpace.VMEM),   # bg+bx (F_int,1)
            pl.BlockSpec(memory_space=pltpu.MemorySpace.VMEM),   # w_psi (1,F_int)
            pl.BlockSpec(memory_space=pltpu.MemorySpace.SMEM),   # b_psi (1,1)
        ],
        out_specs=pl.BlockSpec((nb, F_l, tile_p), lambda bi, pi: (bi, 0, pi)),
        compiler_params=pltpu.CompilerParams(
            dimension_semantics=("parallel", "parallel"),
            vmem_limit_bytes=vmem_limit),
        cost_estimate=cost,
    )(g_r, x_r, wg_k, wx_k, b_k, wp_k, bp_k)

    # no slicing needed (ragged blocks were clipped); reshape back is free.
    return out_flat.reshape(N, F_l, H, W)


# --------------------------- pure-JAX reference -----------------------------

def attention_block_ref(g_nchw, x_nchw, params, eps=1e-5):
    def conv1x1_bn(inp, w, b, gamma, beta, mean, var):
        y = jnp.einsum('nchw,oc->nohw', inp, w) + b[None, :, None, None]
        scale = gamma / jnp.sqrt(var + eps)
        return (y - mean[None, :, None, None]) * scale[None, :, None, None] \
               + beta[None, :, None, None]

    g1 = conv1x1_bn(g_nchw, params['wg'], params['bg'], params['g_gamma'],
                    params['g_beta'], params['g_mean'], params['g_var'])
    x1 = conv1x1_bn(x_nchw, params['wx'], params['bx'], params['x_gamma'],
                    params['x_beta'], params['x_mean'], params['x_var'])
    a = jnp.maximum(g1 + x1, 0.0)
    p = conv1x1_bn(a, params['wpsi'], params['bpsi'], params['p_gamma'],
                   params['p_beta'], params['p_mean'], params['p_var'])
    psi = jax.nn.sigmoid(p)
    return x_nchw * psi


# --------------------------------- main -------------------------------------

if __name__ == "__main__":
    # small shapes consistent with the module
    N, F_g, F_l, F_int, H, W = 2, 4, 4, 32, 16, 16

    key = jax.random.PRNGKey(0)
    ks = jax.random.split(key, 16)

    g = jax.random.normal(ks[0], (N, F_g, H, W), dtype=jnp.float32)
    x = jax.random.normal(ks[1], (N, F_l, H, W), dtype=jnp.float32)

    # deterministic parameter init (BatchNorm uses inference/running stats)
    params = {
        'wg':   0.1 * jax.random.normal(ks[2], (F_int, F_g), jnp.float32),
        'bg':   0.1 * jax.random.normal(ks[3], (F_int,), jnp.float32),
        'wx':   0.1 * jax.random.normal(ks[4], (F_int, F_l), jnp.float32),
        'bx':   0.1 * jax.random.normal(ks[5], (F_int,), jnp.float32),
        'wpsi': 0.1 * jax.random.normal(ks[6], (1, F_int), jnp.float32),
        'bpsi': 0.1 * jax.random.normal(ks[7], (1,), jnp.float32),
        'g_gamma': 1.0 + 0.1 * jax.random.normal(ks[8], (F_int,), jnp.float32),
        'g_beta':  0.1 * jax.random.normal(ks[9], (F_int,), jnp.float32),
        'g_mean':  0.1 * jax.random.normal(ks[10], (F_int,), jnp.float32),
        'g_var':   jnp.abs(1.0 + 0.1 * jax.random.normal(ks[11], (F_int,), jnp.float32)),
        'x_gamma': 1.0 + 0.1 * jax.random.normal(ks[12], (F_int,), jnp.float32),
        'x_beta':  0.1 * jax.random.normal(ks[13], (F_int,), jnp.float32),
        'x_mean':  0.1 * jax.random.normal(ks[14], (F_int,), jnp.float32),
        'x_var':   jnp.abs(1.0 + 0.1 * jax.random.normal(ks[15], (F_int,), jnp.float32)),
        'p_gamma': jnp.array([1.2], jnp.float32),
        'p_beta':  jnp.array([-0.05], jnp.float32),
        'p_mean':  jnp.array([0.1], jnp.float32),
        'p_var':   jnp.array([0.9], jnp.float32),
    }

    out = attention_block_pallas(g, x, params)
    out = jax.block_until_ready(out)

    ref = attention_block_ref(g, x, params)
    assert out.shape == (N, F_l, H, W)
    assert jnp.allclose(out, ref, atol=1e-5, rtol=1e-5), \
        f"max err {jnp.max(jnp.abs(out - ref))}"

    print("KERNEL_OK")
</pallas_src>

<mosaic_0001>
module attributes {stable_mosaic.version = 11 : i64} {
  func.func @_attention_block_kernel(%arg0: i32, %arg1: i32, %arg2: memref<1x4x256xf32, #tpu.memory_space<vmem>>, %arg3: memref<1x4x256xf32, #tpu.memory_space<vmem>>, %arg4: memref<32x4xf32, #tpu.memory_space<vmem>>, %arg5: memref<32x4xf32, #tpu.memory_space<vmem>>, %arg6: memref<32x1xf32, #tpu.memory_space<vmem>>, %arg7: memref<1x32xf32, #tpu.memory_space<vmem>>, %arg8: memref<1x1xf32, #tpu.memory_space<smem>>, %arg9: memref<1x4x256xf32, #tpu.memory_space<vmem>>) attributes {dimension_semantics = [#tpu.dimension_semantics<parallel>, #tpu.dimension_semantics<parallel>], iteration_bounds = array<i64: 2, 1>, scalar_prefetch = 0 : i64, scratch_operands = 0 : i64, tpu.core_type = #tpu.core_type<tc>, window_params = [{transform_indices = @transform_0, window_bounds = array<i64: 1, 4, 256>}, {transform_indices = @transform_1, window_bounds = array<i64: 1, 4, 256>}, {pipeline_mode = #tpu.pipeline_mode<synchronous>, transform_indices = @transform_2, window_bounds = array<i64: 32, 4>}, {pipeline_mode = #tpu.pipeline_mode<synchronous>, transform_indices = @transform_3, window_bounds = array<i64: 32, 4>}, {pipeline_mode = #tpu.pipeline_mode<synchronous>, transform_indices = @transform_4, window_bounds = array<i64: 32, 1>}, {pipeline_mode = #tpu.pipeline_mode<synchronous>, transform_indices = @transform_5, window_bounds = array<i64: 1, 32>}, {transform_indices = @transform_6, window_bounds = array<i64: 1, 1>}, {transform_indices = @transform_7, window_bounds = array<i64: 1, 4, 256>}]} {
    %c0 = arith.constant 0 : index
    %c0_0 = arith.constant 0 : index
    %c0_1 = arith.constant 0 : index
    %0 = vector.load %arg2[%c0, %c0_0, %c0_1] : memref<1x4x256xf32, #tpu.memory_space<vmem>>, vector<1x4x256xf32>
    %1 = vector.shape_cast %0 : vector<1x4x256xf32> to vector<4x256xf32>
    %c0_2 = arith.constant 0 : index
    %c0_3 = arith.constant 0 : index
    %c0_4 = arith.constant 0 : index
    %2 = vector.load %arg3[%c0_2, %c0_3, %c0_4] : memref<1x4x256xf32, #tpu.memory_space<vmem>>, vector<1x4x256xf32>
    %3 = vector.shape_cast %2 : vector<1x4x256xf32> to vector<4x256xf32>
    %c0_5 = arith.constant 0 : index
    %c0_6 = arith.constant 0 : index
    %4 = vector.load %arg4[%c0_5, %c0_6] : memref<32x4xf32, #tpu.memory_space<vmem>>, vector<32x4xf32>
    %cst = arith.constant dense<0.000000e+00> : vector<32x256xf32>
    %5 = tpu.matmul %4, %1, %cst {dimension_numbers = #tpu.dot_dimension_numbers<[1], [0], [0], [1], [0, 0, 1, 1], [], []>} : vector<32x4xf32>, vector<4x256xf32>, vector<32x256xf32> -> vector<32x256xf32>
    %c0_7 = arith.constant 0 : index
    %c0_8 = arith.constant 0 : index
    %6 = vector.load %arg5[%c0_7, %c0_8] : memref<32x4xf32, #tpu.memory_space<vmem>>, vector<32x4xf32>
    %cst_9 = arith.constant dense<0.000000e+00> : vector<32x256xf32>
    %7 = tpu.matmul %6, %3, %cst_9 {dimension_numbers = #tpu.dot_dimension_numbers<[1], [0], [0], [1], [0, 0, 1, 1], [], []>} : vector<32x4xf32>, vector<4x256xf32>, vector<32x256xf32> -> vector<32x256xf32>
    %8 = arith.addf %5, %7 : vector<32x256xf32>
    %c0_10 = arith.constant 0 : index
    %c0_11 = arith.constant 0 : index
    %9 = vector.load %arg6[%c0_10, %c0_11] : memref<32x1xf32, #tpu.memory_space<vmem>>, vector<32x1xf32>
    %10 = vector.broadcast %9 : vector<32x1xf32> to vector<32x256xf32>
    %11 = arith.addf %8, %10 : vector<32x256xf32>
    %cst_12 = arith.constant 0.000000e+00 : f32
    %12 = vector.broadcast %cst_12 : f32 to vector<32x256xf32>
    %13 = arith.maximumf %11, %12 : vector<32x256xf32>
    %c0_13 = arith.constant 0 : index
    %c0_14 = arith.constant 0 : index
    %14 = vector.load %arg7[%c0_13, %c0_14] : memref<1x32xf32, #tpu.memory_space<vmem>>, vector<1x32xf32>
    %cst_15 = arith.constant dense<0.000000e+00> : vector<1x256xf32>
    %15 = tpu.matmul %14, %13, %cst_15 {dimension_numbers = #tpu.dot_dimension_numbers<[1], [0], [0], [1], [0, 0, 1, 1], [], []>} : vector<1x32xf32>, vector<32x256xf32>, vector<1x256xf32> -> vector<1x256xf32>
    %c0_16 = arith.constant 0 : index
    %c0_17 = arith.constant 0 : index
    %16 = memref.load %arg8[%c0_16, %c0_17] : memref<1x1xf32, #tpu.memory_space<smem>>
    %17 = vector.broadcast %16 : f32 to vector<1x256xf32>
    %18 = arith.addf %15, %17 : vector<1x256xf32>
    %19 = arith.negf %18 : vector<1x256xf32>
    %20 = math.exp %19 : vector<1x256xf32>
    %cst_18 = arith.constant 1.000000e+00 : f32
    %21 = vector.broadcast %cst_18 : f32 to vector<1x256xf32>
    %22 = arith.addf %21, %20 : vector<1x256xf32>
    %23 = arith.divf %21, %22 : vector<1x256xf32>
    %24 = vector.broadcast %23 : vector<1x256xf32> to vector<4x256xf32>
    %25 = arith.mulf %3, %24 : vector<4x256xf32>
    %c0_19 = arith.constant 0 : index
    %c0_20 = arith.constant 0 : index
    %c0_21 = arith.constant 0 : index
    %26 = vector.load %arg9[%c0_19, %c0_20, %c0_21] : memref<1x4x256xf32, #tpu.memory_space<vmem>>, vector<1x4x256xf32>
    %27 = vector.shape_cast %26 : vector<1x4x256xf32> to vector<4x256xf32>
    %28 = vector.shape_cast %25 : vector<4x256xf32> to vector<1x4x256xf32>
    tpu.vector_store %arg9[%c0_19, %c0_20, %c0_21], %28 {strides = array<i32>} : memref<1x4x256xf32, #tpu.memory_space<vmem>>, vector<1x4x256xf32>,
    return
  }
  func.func @transform_0(%arg0: i32, %arg1: i32) -> (i32, i32, i32) {
    %c0_i32 = arith.constant 0 : i32
    %c0_i32_0 = arith.constant 0 : i32
    return %arg0, %c0_i32, %arg1 : i32, i32, i32
  }
  func.func @transform_1(%arg0: i32, %arg1: i32) -> (i32, i32, i32) {
    %c0_i32 = arith.constant 0 : i32
    %c0_i32_0 = arith.constant 0 : i32
    return %arg0, %c0_i32, %arg1 : i32, i32, i32
  }
  func.func @transform_2(%arg0: i32, %arg1: i32) -> (i32, i32) {
    %c0_i32 = arith.constant 0 : i32
    %c0_i32_0 = arith.constant 0 : i32
    %c0_i32_1 = arith.constant 0 : i32
    return %c0_i32, %c0_i32_0 : i32, i32
  }
  func.func @transform_3(%arg0: i32, %arg1: i32) -> (i32, i32) {
    %c0_i32 = arith.constant 0 : i32
    %c0_i32_0 = arith.constant 0 : i32
    %c0_i32_1 = arith.constant 0 : i32
    return %c0_i32, %c0_i32_0 : i32, i32
  }
  func.func @transform_4(%arg0: i32, %arg1: i32) -> (i32, i32) {
    %c0_i32 = arith.constant 0 : i32
    %c0_i32_0 = arith.constant 0 : i32
    %c0_i32_1 = arith.constant 0 : i32
    return %c0_i32, %c0_i32_0 : i32, i32
  }
  func.func @transform_5(%arg0: i32, %arg1: i32) -> (i32, i32) {
    %c0_i32 = arith.constant 0 : i32
    %c0_i32_0 = arith.constant 0 : i32
    %c0_i32_1 = arith.constant 0 : i32
    return %c0_i32, %c0_i32_0 : i32, i32
  }
  func.func @transform_6(%arg0: i32, %arg1: i32) -> (i32, i32) {
    %c0_i32 = arith.constant 0 : i32
    %c0_i32_0 = arith.constant 0 : i32
    %c0_i32_1 = arith.constant 0 : i32
    return %c0_i32, %c0_i32_0 : i32, i32
  }
  func.func @transform_7(%arg0: i32, %arg1: i32) -> (i32, i32, i32) {
    %c0_i32 = arith.constant 0 : i32
    %c0_i32_0 = arith.constant 0 : i32
    return %arg0, %c0_i32, %arg1 : i32, i32, i32
  }
}

</mosaic_0001>

<bundles_post_ra>
// kernel: tpu_custom_call.1
= control target key start
LH: loop header
LB: loop body
LE: loop exit
PB: predicated region body
PF: predicated region fallthrough
CT: control target
= control target key end

     0   :  { %s1160_s0 = inlined_call_operand.vmem [shape: f32[2,4,256], index: 0, kind: input, shape index: {}]   ;;  %s1161_s1 = inlined_call_operand.vmem [shape: f32[2,4,256], index: 1, kind: input, shape index: {}]   ;;  %s1162_s2 = inlined_call_operand.vmem [shape: f32[32,4], index: 2, kind: input, shape index: {}]   ;;  %s1163_s3 = inlined_call_operand.vmem [shape: f32[32,4], index: 3, kind: input, shape index: {}]   ;;  %s1164_s4 = inlined_call_operand.vmem [shape: f32[32,1], index: 4, kind: input, shape index: {}]   ;;  %s1165_s5 = inlined_call_operand.vmem [shape: f32[1,32], index: 5, kind: input, shape index: {}]   ;;  %s1166_s6 = inlined_call_operand.<no memory space> [shape: f32[1,1], index: 6, kind: input, shape index: {}]   ;;  %s1167_s7 = inlined_call_operand.hbm [shape: f32[2,4,256], index: 7, kind: output, shape index: {}]  }
   0x1   :  { %12 = sst [smem:[#allocation2]] %s1166_s6 }
   0x2   :  { %13 = vsyncpa [#allocation4], 0 }
   0x3   :  { %15 = vsyncpa [#allocation4 + $0x1], 0  ;;  %s992_s26 = smov 0   ;;  %s994_s27 = smov 0  }
   0x4   :  { %s996_s28 = smov 0   ;;  %s998_s29 = smov 0  }
   0x5   :  { %s1000_s30 = smov 0   ;;  %s1002_s8 = smov 0  }
   0x6 LB: > { %s760_s6 = sadd.s32 4294967295, %s946_s8   ;;  %s761_s9 = sadd.s32 4294967294, %s946_s8   ;;  %s946_s8 = sphi %s1002_s8, %s21_s8   ;;  %s942_s30 = sphi %s1000_s30, %s1174_s30   ;;  %s938_s29 = sphi %s998_s29, %s1173_s29   ;;  %s934_s28 = sphi %s996_s28, %s1172_s28   ;;  %s930_s27 = sphi %s994_s27, %s1171_s27   ;;  %s926_s26 = sphi %s992_s26, %s1170_s26  }
   0x7   : > { %s33_s10 = sadd.s32 1, %s942_s30  ;;  %s203_s11 = sadd.s32 1, %s934_s28 }
   0x8   : > { %p35_p0 = scmp.ge.s32.totalorder %s33_s10, 2  ;;  %p213_p1 = scmp.ne.s32.totalorder %s934_s28, %s930_s27 }
   0x9   : > { %p214_p2 = scmp.eq.s32.totalorder %s760_s6, 1  ;;  %p219_p3 = scmp.ne.s32.totalorder %s930_s27, %s926_s26 }
   0xa   : > { %s1176_s10 = smov (%p35_p0, %s33_s10), 0  ;;  %p220_p5 = scmp.eq.s32.totalorder %s761_s9, 1 }
   0xb   : > { %p1032_p4 = por %p214_p2, %p213_p1  ;;  %s198_s13 = ssub.s32 %s942_s30, %s1176_s10 }
   0xc   : > { %p764_p6 = scmp.ge.s32.totalorder %s946_s8, 1  ;;  %p201_p7 = scmp.eq.s32.totalorder %s198_s13, 0 }
   0xd   : > { %p1039_p8 = por %p220_p5, %p219_p3  ;;  %p279_p9 = scmp.lt.s32.totalorder %s946_s8, 3 }
   0xe   : > { %s1045_s15 = scalar_select %p201_p7, %s934_s28, %s203_s11  }
   0xf   : > { %p280_p10 = pnand %p764_p6, %p279_p9 }
  0x10   : > { %p325_p11 = scmp.lt.s32.totalorder (!%p280_p10), %s938_s29, 1  ;;  %s321_s23 = sand.u32 (!%p280_p10), 1, %s930_s27  }
  0x11   : > { %283 = sbr.rel (%p280_p10) target bundleno = 379 (0x17b), region = 48  ;;  %s765_s24 = sshll.u32 (!%p280_p10), %s321_s23, 3 }
  0x12   : > { %s801_s25 = sshll.u32 (!%p280_p10), %s938_s29, 3  ;;  %s648_s17 = scalar_lea.sflag (!%p280_p10), [#allocation4], %s321_s23 }
  0x13   : > { %s661_s11 = scalar_lea.hbm (!%p280_p10), %s1167_s7, %s801_s25 }
  0x14   : > { %s665_s16 = sshll.u32 (!%p280_p10), %s661_s11, 4  ;;  %s666_s16 = int_to_ptr.hbm [resolvable:$true] %s665_s16 }
  0x16   : > { %v514_v0 = vld [vmem:[%s1164_s4 + $0x8] sm:$0xff]  ;;  %s326_s18 = scalar_select %p325_p11, %s938_s29, 1  ;;  %v948_v1 = vmov 0   ;;  %v513_v3 = vld [vmem:[%s1164_s4] sm:$0xff]  ;;  %vm372_vm0 = vcmask 1043456   ;;  %vm359_vm1 = vcmask 31744  }
  0x17   : > { %859 = vset.pattern.permute.xlu1 %v948_v1  ;;  %858 = vset.pattern.permute.xlu0 %v948_v1  ;;  %v351_v5 = vld [vmem:[%s1163_s3] sm:$0xff]  ;;  %v516_v8 = vld [vmem:[%s1164_s4 + $0x18] sm:$0xff]  ;;  %v352_v10 = vld [vmem:[%s1163_s3 + $0x8] sm:$0xff]  ;;  %vm556_vm2 = vcmask 261120   ;;  %s323_s29 = scalar_lea.vmem [#allocation3], %s765_s24 }
  0x18   : > { %524 = vperm.xlu1 %859, %v514_v0   ;;  %s799_s19 = sshll.u32 %s326_s18, 3  ;;  %534 = vperm.xlu0 %858, %v516_v8   ;;  %v347_v9 = vld [vmem:[%s1162_s2] sm:$0xff]  ;;  %v515_v13 = vld [vmem:[%s1164_s4 + $0x10] sm:$0xff]  ;;  %v348_v14 = vld [vmem:[%s1162_s2 + $0x8] sm:$0xff]  ;;  %s663_s13 = sshll.u32 %s323_s29, 4  ;;  %s664_s13 = int_to_ptr.vmem [resolvable:$true] %s663_s13 }
  0x19   : > { %s342_s22 = scalar_lea.vmem %s1161_s1, %s799_s19  ;;  %s332_s9 = scalar_lea.vmem %s1160_s0, %s799_s19  ;;  %v353_v15 = vld [vmem:[%s1163_s3 + $0x10] sm:$0xff]  ;;  %v354_v17 = vld [vmem:[%s1163_s3 + $0x18] sm:$0xff]  ;;  %v553_v63 = vld [vmem:[%s1165_s5] sm:$0x1] }
  0x1a   : > { %v1055_v2 = vld [vmem:[%s342_s22] sm:$0xff]  ;;  %v349_v16 = vld [vmem:[%s1162_s2 + $0x10] sm:$0xff]  ;;  %v350_v18 = vld [vmem:[%s1162_s2 + $0x18] sm:$0xff]  ;;  %s554_s22 = sld [smem:[#allocation2]]  ;;  %s882_s18 = sshra.s32 %s666_s16, 4  ;;  %s883_s18 = int_to_ptr.hbm [resolvable:$true] %s882_s18 }
  0x1b   : > { %356 = vst [vmem:[#allocation1] ss:$2 sm:$0xff] %v1055_v2  ;;  %v345_v4 = vld [vmem:[%s332_s9] sm:$0xff]  ;;  %s884_s19 = scalar_lea.hbm %s883_s18, 8  ;;  %p889_p1 = scmp.lt.s32.totalorder %s883_s18, %s1167_s7 }
  0x1c   : > { %p885_p12 = scmp.ne.s32.totalorder %s883_s18, %s884_s19 }
  0x1e   : > { %p886_p13 = pnand %p885_p12, %p1032_p4 }
  0x20   : > { %519 = vperm.xlu1 %859, %v513_v3   ;;  %529 = vperm.xlu0 %858, %v515_v13   ;;  %v555_v0 = vstv %s554_s22  ;;  %p887_p0 = pneg %p886_p13  ;;  %s888_s22 = scalar_lea.hbm %s1167_s7, 16 }
  0x21   : > { %p890_p2 = scmp.lt.s32.totalorder %s888_s22, %s884_s19 }
  0x22   : > { %v357_v6 = vld.sshfl [vmem:[#allocation1] sm:$0xff pattern:$0x75316420]  ;;  %v358_v7 = vld.sshfl [vmem:[#allocation1 + $0x8] sm:$0xff pattern:$0x75316420] }
  0x23   : > { %436 = vst [vmem:[#allocation1] ss:$2 sm:$0xff] %v345_v4  ;;  %770 = vmatpush.msk.msra.mxu0 %vm372_vm0, %v357_v6  ;;  %775 = vmatpush.msk.msra.mxu1 %vm372_vm0, %v358_v7  ;;  %p891_p3 = por %p890_p2, %p889_p1 }
  0x24   : > { %771 = vmatmul.msk.f32.vlgmr.msra.gmra.mxu0 %vm359_vm1, %v351_v5  ;;  %776 = vmatmul.msk.f32.vlgmr.msra.gmra.mxu1 %vm359_vm1, %v351_v5 }
  0x25   : > { %p892_p5 = pnand %p891_p3, %p887_p0 }
  0x2a   : > { %v437_v11 = vld.sshfl [vmem:[#allocation1] sm:$0xff pattern:$0x75316420]  ;;  %v438_v12 = vld.sshfl [vmem:[#allocation1 + $0x8] sm:$0xff pattern:$0x75316420] }
  0x2b   : > { %780 = vmatpush.msk.msra.mxu2 %vm372_vm0, %v437_v11  ;;  %785 = vmatpush.msk.msra.mxu3 %vm372_vm0, %v438_v12 }
  0x2c   : > { %781 = vmatmul.msk.f32.vlgmr.msra.gmra.mxu2 %vm359_vm1, %v347_v9  ;;  %786 = vmatmul.msk.f32.vlgmr.msra.gmra.mxu3 %vm359_vm1, %v347_v9 }
  0x2d   : > { %772 = vmatmul.msk.f32.gmra.mxu0 %vm359_vm1, %v352_v10  ;;  %777 = vmatmul.msk.f32.gmra.mxu1 %vm359_vm1, %v352_v10 }
  0x34   : > { %782 = vmatmul.msk.f32.gmra.mxu2 %vm359_vm1, %v348_v14  ;;  %787 = vmatmul.msk.f32.gmra.mxu3 %vm359_vm1, %v348_v14 }
  0x35   : > { %773 = vmatmul.msk.f32.gmra.mxu0 %vm359_vm1, %v353_v15  ;;  %778 = vmatmul.msk.f32.gmra.mxu1 %vm359_vm1, %v353_v15 }
  0x3c   : > { %783 = vmatmul.msk.f32.gmra.mxu2 %vm359_vm1, %v349_v16  ;;  %788 = vmatmul.msk.f32.gmra.mxu3 %vm359_vm1, %v349_v16 }
  0x3d   : > { %774 = vmatmul.msk.f32.gmra.mxu0 %vm359_vm1, %v354_v17  ;;  %779 = vmatmul.msk.f32.gmra.mxu1 %vm359_vm1, %v354_v17 }
  0x44   : > { %784 = vmatmul.msk.f32.gmra.mxu2 %vm359_vm1, %v350_v18  ;;  %789 = vmatmul.msk.f32.gmra.mxu3 %vm359_vm1, %v350_v18 }
  0x8a   : > { %v535_v29 = vpop.permute.xlu0 %534  ;;  %v525_v32 = vpop.permute.xlu1 %524 }
  0x92   : > { %v530_v37 = vpop.permute.xlu0 %529  ;;  %v520_v50 = vpop.permute.xlu1 %519 }
  0xa1   : > { %v394_v19 = vpop.f32.mrf.mxu0  ;;  %v423_v20 = vpop.f32.mrf.mxu1 }
  0xaa   : > { %v397_v23 = vpop.f32.mrf.mxu0  ;;  %v426_v24 = vpop.f32.mrf.mxu1 }
  0xaf   : > { %v472_v21 = vpop.f32.mrf.mxu2  ;;  %v501_v22 = vpop.f32.mrf.mxu3 }
  0xb0   : > { %v473_v44 = vadd.f32 %v472_v21, %v394_v19  ;;  %v502_v45 = vadd.f32 %v501_v22, %v423_v20 }
  0xb2   : > { %v400_v27 = vpop.f32.mrf.mxu0  ;;  %v429_v28 = vpop.f32.mrf.mxu1  ;;  %v537_v55 = vadd.f32 %v520_v50, %v473_v44  ;;  %v538_v56 = vadd.f32 %v520_v50, %v502_v45 }
  0xb4   : > { %v545_v61 = vmax.f32 %v537_v55, 0.0  ;;  %v546_v62 = vmax.f32 %v538_v56, 0.0 }
  0xb7   : > { %v475_v25 = vpop.f32.mrf.mxu2  ;;  %v504_v26 = vpop.f32.mrf.mxu3 }
  0xb8   : > { %v476_v40 = vadd.f32 %v475_v25, %v397_v23  ;;  %v505_v41 = vadd.f32 %v504_v26, %v426_v24 }
  0xba   : > { %v403_v33 = vpop.f32.mrf.mxu0  ;;  %v432_v34 = vpop.f32.mrf.mxu1  ;;  %v539_v53 = vadd.f32 %v525_v32, %v476_v40  ;;  %v540_v54 = vadd.f32 %v525_v32, %v505_v41 }
  0xbc   : > { %v547_v59 = vmax.f32 %v539_v53, 0.0  ;;  %v548_v60 = vmax.f32 %v540_v54, 0.0 }
  0xbf   : > { %v478_v30 = vpop.f32.mrf.mxu2  ;;  %v507_v31 = vpop.f32.mrf.mxu3 }
  0xc0   : > { %v479_v35 = vadd.f32 %v478_v30, %v400_v27  ;;  %v508_v36 = vadd.f32 %v507_v31, %v429_v28 }
  0xc2   : > { %v541_v46 = vadd.f32 %v530_v37, %v479_v35  ;;  %v542_v47 = vadd.f32 %v530_v37, %v508_v36 }
  0xc4   : > { %v549_v57 = vmax.f32 %v541_v46, 0.0  ;;  %v550_v58 = vmax.f32 %v542_v47, 0.0 }
  0xc7   : > { %v481_v38 = vpop.f32.mrf.mxu2  ;;  %v510_v39 = vpop.f32.mrf.mxu3 }
  0xc8   : > { %v482_v42 = vadd.f32 %v481_v38, %v403_v33  ;;  %v511_v43 = vadd.f32 %v510_v39, %v432_v34 }
  0xca   : > { %v543_v48 = vadd.f32 %v535_v29, %v482_v42  ;;  %v544_v49 = vadd.f32 %v535_v29, %v511_v43 }
  0xcc   : > { %v551_v51 = vmax.f32 %v543_v48, 0.0  ;;  %v552_v52 = vmax.f32 %v544_v49, 0.0 }
  0xce   : > { %572 = vmatpush.msrb.mxu0 %v551_v51  ;;  %592 = vmatpush.msrb.mxu1 %v552_v52 }
  0xd0   : > { %573 = vmatpush.msrb.mxu0 %v549_v57  ;;  %593 = vmatpush.msrb.mxu1 %v550_v58 }
  0xd2   : > { %574 = vmatpush.msrb.mxu0 %v547_v59  ;;  %594 = vmatpush.msrb.mxu1 %v548_v60 }
  0xd4   : > { %575 = vmatpush.msrb.mxu0 %v545_v61  ;;  %595 = vmatpush.msrb.mxu1 %v546_v62 }
  0xd5   : > { %791 = vmatmul.msk.f32.vlgmr.msrb.gmra.mxu1 %vm556_vm2, %v553_v63  ;;  %790 = vmatmul.msk.f32.vlgmr.msrb.gmra.mxu0 %vm556_vm2, %v553_v63 }
 0x152   : > { %v597_v1 = vpop.f32.mrf.mxu1  ;;  %v577_v3 = vpop.f32.mrf.mxu0 }
 0x153   : > { %v598_v4 = vadd.f32 %v597_v1, %v555_v0  ;;  %v578_v5 = vadd.f32 %v577_v3, %v555_v0 }
 0x155   : > { %v793_v6 = vmul.f32 -1.442695, %v598_v4  ;;  %v792_v7 = vmul.f32 -1.442695, %v578_v5 }
 0x157   : > { %860 = vpow2.f32 %v793_v6 }
 0x158   : > { %862 = vpow2.f32 %v792_v7 }
 0x15d   : > { %v861_v8 = vpop.eup %860 }
 0x15e   : > { %v863_v9 = vpop.eup %862  ;;  %v607_v10 = vadd.f32 1.0, %v861_v8 }
 0x15f   : > { %v606_v11 = vadd.f32 1.0, %v863_v9 }
 0x160   : > { %864 = vrcp.f32 %v607_v10  ;;  %v634_v17 = vand.u32 2147483648, %v607_v10  ;;  %v632_v21 = vand.u32 2147483647, %v607_v10  ;;  %vm628_vm5 = vweird.f32 %v607_v10 }
 0x161   : > { %866 = vrcp.f32 %v606_v11  ;;  %v619_v20 = vand.u32 2147483648, %v606_v11  ;;  %v617_v23 = vand.u32 2147483647, %v606_v11  ;;  %vm613_vm6 = vweird.f32 %v606_v11 }
 0x162   : > { %v635_v26 = vor.u32 1.1754944e-38, %v634_v17  ;;  %vm633_vm9 = vcmp.eq.f32.partialorder %v632_v21, 8.507059e+37 }
 0x163   : > { %v620_v27 = vor.u32 1.1754944e-38, %v619_v20  ;;  %vm618_vm10 = vcmp.eq.f32.partialorder %v617_v23, 8.507059e+37 }
 0x166   : > { %v865_v12 = vpop.eup %864 }
 0x167   : > { %v867_v13 = vpop.eup %866  ;;  %v624_v14 = vmul.f32 %v865_v12, %v607_v10  ;;  %vm629_vm3 = vweird.f32 %v865_v12 }
 0x168   : > { %v609_v15 = vmul.f32 %v867_v13, %v606_v11  ;;  %vm614_vm4 = vweird.f32 %v867_v13  ;;  %vm630_vm7 = vmor %vm628_vm5, %vm629_vm3 }
 0x169   : > { %v625_v16 = vsub.f32 1.0, %v624_v14  ;;  %vm615_vm8 = vmor %vm613_vm6, %vm614_vm4 }
 0x16a   : > { %v610_v18 = vsub.f32 1.0, %v609_v15 }
 0x16b   : > { %v626_v19 = vmul.f32 %v865_v12, %v625_v16 }
 0x16c   : > { %v611_v22 = vmul.f32 %v867_v13, %v610_v18 }
 0x16d   : > { %v627_v24 = vadd.f32 %v865_v12, %v626_v19 }
 0x16e   : > { %v612_v25 = vadd.f32 %v867_v13, %v611_v22 }
 0x16f   : > { %v631_v28 = vsel %vm630_vm7, %v865_v12, %v627_v24 }
 0x170   : > { %v616_v29 = vsel %vm615_vm8, %v867_v13, %v612_v25  ;;  %v636_v30 = vsel %vm633_vm9, %v635_v26, %v631_v28 }
 0x171   : > { %v621_v31 = vsel %vm618_vm10, %v620_v27, %v616_v29  ;;  %v639_v32 = vperm.slane %v636_v30, 0 }
 0x172   : > { %v638_v33 = vperm.slane %v621_v31, 0 }
 0x173   : > { %v642_v34 = vrot.slane %v639_v32, 4 }
 0x175   : > { %v643_v35 = vsel %vm372_vm0, %v638_v33, %v642_v34 }
 0x176   : > { %v645_v36 = vmul.f32 %v643_v35, %v1055_v2 }
 0x178   : > { %646 = vst [vmem:[%s323_s29] sm:$0xff] %v645_v36 }
 0x179   : > { %895 = shalt.err (!%p892_p5)
}
 0x17a   : > { %802 = dma.vmem_to_hbm [thread:$0]  (%p1032_p4), %s664_s13, 128, %s666_s16, %s648_s17  }
 0x17b PF: > { %p808_p6 = scmp.ge.s32.totalorder %s946_s8, 2  ;;  %s677_s23 = sand.u32 1, %s926_s26  }
 0x17c   : > { %s678_s6 = scalar_lea.sflag [#allocation4], %s677_s23 }
 0x17d   : > { %p805_p7 = pnand %p808_p6, %p1039_p8 }
 0x17f   : > { %p806_p9 = pneg %p805_p7 }
 0x181   : > { %921 = dma.done.wait (%p806_p9), %s678_s6, 128  }
 0x182   : > { %923 = vsyncadd (%p806_p9), %s678_s6, 4294967168  ;;  %s21_s8 = sadd.s32 1, %s946_s8   ;;  %s1170_s26 = smov %s930_s27 }
 0x183   : > { %p18_p10 = scmp.ge.s32.totalorder %s21_s8, 4   ;;  %s1171_s27 = smov %s934_s28 }
 0x184   : > { %s1172_s28 = smov %s1045_s15  ;;  %s1173_s29 = smov %s942_s30 }
 0x185   : > { %s1174_s30 = smov %s1176_s10  ;;  %20 = sbr.rel (!%p18_p10) target bundleno = 6 (0x6), region = 86 }
 0x18a   :  { %684 = vsyncpa [#allocation4], 1 }
 0x18b   :  { %686 = vsyncpa [#allocation4 + $0x1], 1 }

</bundles_post_ra>
